<compile_context>
chip_gen: v7x
topology: tpu7x:2x2x1
jax: 0.10.0
libtpu: 0.0.40
codegen_flags: <defaults>
</compile_context>

<pallas_src>
import functools
import math

import jax
import jax.numpy as jnp
from jax.experimental import pallas as pl
from jax.experimental.pallas import tpu as pltpu

_LANES = 128
_TARGET_TILE_BYTES = 1 << 20      # ~1 MiB per input-operand tile (>=85% of HBM roofline)
_MIN_SPLIT_ROWS = 256             # only split tensors > 32K elements into several blocks
_SINGLE_BLOCK_BYTES = 1 << 20     # ragged/odd shapes up to ~1 MiB run as one full block

_OPS = {
    "Or": jnp.logical_or,
    "And": jnp.logical_and,
    "Xor": jnp.logical_xor,
}


def _cdiv(a, b):
    return -(-a // b)


def _round_up(a, m):
    return _cdiv(a, m) * m


# ----------------------------------------------------------------------------
# Kernel body
# ----------------------------------------------------------------------------
def _logical_kernel(a_ref, b_ref, o_ref, *, op: str, b_kind: str):
    """b_kind:
         'block'  - b has the same (block) shape as a
         'row'    - b is a (block_rows, 1) bool column (lane-broadcasts in the op)
         'scalar' - b is a (1, 1) int32 living in SMEM
    """
    a = a_ref[...]
    if a.dtype != jnp.bool_:
        a = a != 0                      # normalize in the narrow dtype, before any broadcast
    if b_kind == "scalar":
        b = b_ref[0, 0] != 0            # scalar from SMEM; broadcasts inside the logical op
    else:
        b = b_ref[...]
        if b.dtype != jnp.bool_:
            b = b != 0
        # 'row': (block_rows, 1) implicitly lane-broadcasts inside the logical op.
    o_ref[...] = _OPS[op](a, b)


# ----------------------------------------------------------------------------
# pallas_call wrappers
# ----------------------------------------------------------------------------
def _slab_call(a2, b_arr, b_kind, op):
    """a2: (rows, 128) slab; b_arr per b_kind. Returns (rows, 128) bool."""
    rows = a2.shape[0]
    max_item = a2.dtype.itemsize
    if b_kind == "block":
        max_item = max(max_item, b_arr.dtype.itemsize)

    # ~1 MiB per input operand tile; rows a multiple of 32 (safe for 1-byte tiling).
    block_rows = max(32, (_TARGET_TILE_BYTES // (_LANES * max_item)) // 32 * 32)
    if rows > _MIN_SPLIT_ROWS:
        # Keep >= 2 blocks so the "parallel" axis can be sharded over both of
        # v7x's TensorCores (harmless extra grid step on v5e/v6e).
        block_rows = min(block_rows, _round_up(_cdiv(rows, 2), 32))
    block_rows = min(block_rows, rows)
    grid = (_cdiv(rows, block_rows),)

    in_specs = [pl.BlockSpec((block_rows, _LANES), lambda i: (i, 0))]
    per_step_bytes = block_rows * _LANES * (a2.dtype.itemsize + 1)  # a tile + bool out tile
    if b_kind == "block":
        in_specs.append(pl.BlockSpec((block_rows, _LANES), lambda i: (i, 0)))
        per_step_bytes += block_rows * _LANES * b_arr.dtype.itemsize
    elif b_kind == "row":
        in_specs.append(pl.BlockSpec((block_rows, 1), lambda i: (i, 0)))
        per_step_bytes += block_rows * b_arr.dtype.itemsize
    else:  # 'scalar' -> whole (1,1) int32 lives in SMEM
        in_specs.append(pl.BlockSpec(memory_space=pltpu.MemorySpace.SMEM))

    # Double-buffered inputs/output + headroom: stays under the default scoped
    # VMEM limit on every generation (v5e 16 MiB, v6e/v7x 32 MiB).
    vmem_limit = int(2 * per_step_bytes + (4 << 20))

    return pl.pallas_call(
        functools.partial(_logical_kernel, op=op, b_kind=b_kind),
        out_shape=jax.ShapeDtypeStruct((rows, _LANES), jnp.bool_),
        grid_spec=pltpu.PrefetchScalarGridSpec(
            num_scalar_prefetch=0,
            grid=grid,
            in_specs=in_specs,
            out_specs=pl.BlockSpec((block_rows, _LANES), lambda i: (i, 0)),
        ),
        compiler_params=pltpu.CompilerParams(
            dimension_semantics=("parallel",),
            vmem_limit_bytes=vmem_limit,
        ),
    )(a2, b_arr)


def _single_block_call(a, b_arr, b_kind, op, out_shape):
    """Odd (non-128-multiple) sizes: run the arrays in their original shape as a
    single full block - no padding or slicing copies.  Only used for tensors
    bounded by _SINGLE_BLOCK_BYTES."""
    rank = max(len(out_shape), 2)
    work_shape = (1,) * (rank - len(out_shape)) + tuple(out_shape)
    a = a.reshape(work_shape)
    zero_map = lambda i: (0,) * rank
    in_specs = [pl.BlockSpec(work_shape, zero_map)]
    if b_kind == "scalar":
        in_specs.append(pl.BlockSpec(memory_space=pltpu.MemorySpace.SMEM))
    else:
        b_arr = b_arr.reshape(work_shape)
        in_specs.append(pl.BlockSpec(work_shape, zero_map))

    out = pl.pallas_call(
        functools.partial(_logical_kernel, op=op, b_kind=b_kind),
        out_shape=jax.ShapeDtypeStruct(work_shape, jnp.bool_),
        grid_spec=pltpu.PrefetchScalarGridSpec(
            num_scalar_prefetch=0,
            grid=(1,),
            in_specs=in_specs,
            out_specs=pl.BlockSpec(work_shape, zero_map),
        ),
        compiler_params=pltpu.CompilerParams(dimension_semantics=("arbitrary",)),
    )(a, b_arr)
    return out.reshape(out_shape)


# ----------------------------------------------------------------------------
# Broadcast helpers (glue)
# ----------------------------------------------------------------------------
def _old_style_broadcast(first, second, axis):
    """ONNX-legacy broadcast: align `second`'s dims to `first` starting at `axis`."""
    rank = first.ndim
    if axis < 0:
        axis += rank
    new_shape = (1,) * axis + tuple(second.shape)
    new_shape = new_shape + (1,) * (rank - len(new_shape))
    return jnp.reshape(second, new_shape)


def _rank_align(x, rank):
    if x.ndim == rank:
        return x
    return x.reshape((1,) * (rank - x.ndim) + tuple(x.shape))


def _row_broadcast_values(second, out_shape):
    """If `second` (rank-aligned; not full-size, not scalar) is constant within
    every 128-lane row of the flattened output (e.g. per-channel NCHW), return
    its per-row values as a (rows, 1) bool column (n/128 bytes).  Else None."""
    rank = len(out_shape)
    shape2 = tuple(second.shape)
    k = rank
    while k > 0 and shape2[k - 1] == 1:
        k -= 1
    inner = math.prod(out_shape[k:])
    if k == 0 or inner % _LANES != 0:
        return None
    head = jnp.broadcast_to(second != 0, tuple(out_shape[:k]) + (1,) * (rank - k))
    head = head.reshape(-1)                       # one bool per trailing block
    reps = inner // _LANES                        # slab rows per trailing block
    rows = math.prod(out_shape) // _LANES
    return jnp.broadcast_to(head[:, None], (head.size, reps)).reshape(rows, 1)


# ----------------------------------------------------------------------------
# Public entry point
# ----------------------------------------------------------------------------
def onnx_logical(first, second, *, operation_type: str, broadcast=None, axis=None):
    if operation_type not in _OPS:
        raise ValueError(f"unsupported op {operation_type}")
    first = jnp.asarray(first)
    second = jnp.asarray(second)

    if broadcast == 1 and axis is not None:
        second = _old_style_broadcast(first, second, axis)

    out_shape = tuple(jnp.broadcast_shapes(first.shape, second.shape))
    n = math.prod(out_shape)
    if n == 0:
        return jnp.zeros(out_shape, jnp.bool_)

    first = _rank_align(first, len(out_shape))
    second = _rank_align(second, len(out_shape))

    # Or/And/Xor are commutative: make `first` the full-size operand when
    # exactly one of the two already has the output shape.
    if tuple(first.shape) != out_shape and tuple(second.shape) == out_shape:
        first, second = second, first
    a_is_full = tuple(first.shape) == out_shape

    if not a_is_full:
        # Both operands need broadcasting (rare): materialize `first` as 1-byte bool.
        # TODO(synk): handle doubly-broadcast shapes without this copy.
        first = jnp.broadcast_to(first != 0, out_shape)
        a_is_full = True

    # ---- decide how the second operand is fed to the kernel -----------------
    if second.size == 1:
        # SMEM scalar: normalized in glue (free), scalar-broadcast in-kernel.
        b_arr = (second.reshape(1, 1) != 0).astype(jnp.int32)
        b_kind = "scalar"
    elif tuple(second.shape) == out_shape:
        b_arr, b_kind = second, "block"
    else:
        col = _row_broadcast_values(second, out_shape)
        if col is not None:
            # Per-channel-style broadcast: one value per 128-lane row (n/128 bytes)
            # instead of materializing the full-size broadcast.
            b_arr, b_kind = col, "row"
        else:
            # General broadcast fallback (1-byte bool).  Cheap for small inputs.
            # TODO(synk): large trailing-dim broadcasts could reuse a periodic
            # VMEM tile via the index_map instead of this copy.
            b_arr, b_kind = jnp.broadcast_to(second != 0, out_shape), "block"

    aligned = n % _LANES == 0
    if aligned:
        rows = n // _LANES
        a2 = first.reshape(rows, _LANES)                   # free, lane-dense view
        b2 = b_arr.reshape(rows, _LANES) if b_kind == "block" else b_arr
        return _slab_call(a2, b2, b_kind, operation_type).reshape(out_shape)

    max_item = first.dtype.itemsize
    if b_kind == "block":
        max_item = max(max_item, b_arr.dtype.itemsize)
    if n * max_item <= _SINGLE_BLOCK_BYTES:
        # Ragged but small: single full block in the original shape (no copies).
        return _single_block_call(first, b_arr, b_kind, operation_type, out_shape)

    # Large & ragged (element count not a multiple of 128): pad to the lane grid.
    # TODO(synk): avoid the pad/slice copies by passing flat (n,) arrays with a
    # masked 1-D final block.
    rows = _cdiv(n, _LANES)
    pad = rows * _LANES - n

    def _pad_slab(x):
        return jnp.pad(x.reshape(-1), (0, pad)).reshape(rows, _LANES)

    a2 = _pad_slab(first)
    b2 = _pad_slab(b_arr) if b_kind == "block" else b_arr
    out2 = _slab_call(a2, b2, b_kind, operation_type)
    return out2.reshape(-1)[:n].reshape(out_shape)


class OnnxLogicalPallas:
    """Mirror of the torch OnnxLogical module using the Pallas kernel."""

    def __init__(self, operation_type: str, broadcast=None, axis=None):
        assert operation_type in _OPS
        self.operation_type = operation_type
        self.broadcast = broadcast
        self.axis = axis

    def __call__(self, first_tensor, second_tensor):
        return onnx_logical(first_tensor, second_tensor,
                            operation_type=self.operation_type,
                            broadcast=self.broadcast, axis=self.axis)


if __name__ == "__main__":
    key = jax.random.PRNGKey(0)
    k1, k2, k3, k4, k5, k6, k7 = jax.random.split(key, 7)

    ok = True

    # NCHW boolean inputs, same shape (lane-dense slab path).
    x = jax.random.bernoulli(k1, 0.5, (2, 4, 16, 16))
    y = jax.random.bernoulli(k2, 0.5, (2, 4, 16, 16))
    for op, ref_fn in (("Or", jnp.logical_or),
                       ("And", jnp.logical_and),
                       ("Xor", jnp.logical_xor)):
        out = jax.block_until_ready(OnnxLogicalPallas(op)(x, y))
        ok &= bool(jnp.array_equal(out, ref_fn(x, y)))
        ok &= out.dtype == jnp.bool_

    # Old-style broadcast (per-channel, axis=1): (rows, 1) column path.
    y_c = jax.random.bernoulli(k3, 0.5, (4,))
    out_bc = jax.block_until_ready(OnnxLogicalPallas("And", broadcast=1, axis=1)(x, y_c))
    ok &= bool(jnp.array_equal(out_bc, jnp.logical_and(x, y_c.reshape(1, 4, 1, 1))))

    # Scalar second operand: SMEM path, in-kernel scalar broadcast.
    y_s = jnp.array(True)
    out_s = jax.block_until_ready(OnnxLogicalPallas("Or")(x, y_s))
    ok &= bool(jnp.array_equal(out_s, jnp.logical_or(x, y_s)))

    # Non-bool dtype + size not a multiple of 128: single-block path, no pad/slice.
    xi = jax.random.randint(k4, (5, 37), 0, 3)
    yi = jax.random.randint(k5, (5, 37), 0, 3)
    out_i = jax.block_until_ready(OnnxLogicalPallas("Xor")(xi, yi))
    ok &= bool(jnp.array_equal(out_i, jnp.logical_xor(xi, yi)))
    ok &= out_i.dtype == jnp.bool_

    # Larger int32 per-channel case: multi-block grid (2 blocks -> both v7x cores)
    # with a masked partial last block and the (rows, 1) broadcast column.
    xl = jax.random.randint(k6, (2, 4, 49, 128), 0, 3)
    yl = jax.random.randint(k7, (4,), 0, 2)
    out_l = jax.block_until_ready(OnnxLogicalPallas("Or", broadcast=1, axis=1)(xl, yl))
    ok &= bool(jnp.array_equal(out_l, jnp.logical_or(xl, yl.reshape(1, 4, 1, 1))))

    if ok:
        print("KERNEL_OK")
    else:
        raise SystemExit("mismatch vs reference")
</pallas_src>

<mosaic_0001>
module attributes {stable_mosaic.version = 11 : i64} {
  func.func @_logical_kernel(%arg0: i32, %arg1: memref<16x128xi32, #tpu.memory_space<vmem>>, %arg2: memref<16x128xi32, #tpu.memory_space<vmem>>, %arg3: memref<16x128xi32, #tpu.memory_space<vmem>>) attributes {dimension_semantics = [#tpu.dimension_semantics<parallel>], iteration_bounds = array<i64: 1>, scalar_prefetch = 0 : i64, scratch_operands = 0 : i64, tpu.core_type = #tpu.core_type<tc>, window_params = [{transform_indices = @transform_0, window_bounds = array<i64: 16, 128>}, {transform_indices = @transform_1, window_bounds = array<i64: 16, 128>}, {transform_indices = @transform_2, window_bounds = array<i64: 16, 128>}]} {
    %c0 = arith.constant 0 : index
    %c0_0 = arith.constant 0 : index
    %0 = vector.load %arg1[%c0, %c0_0] : memref<16x128xi32, #tpu.memory_space<vmem>>, vector<16x128xi32>
    %cst = arith.constant dense<0> : vector<16x128xi32>
    %1 = arith.cmpi ne, %0, %cst : vector<16x128xi32>
    %c0_1 = arith.constant 0 : index
    %c0_2 = arith.constant 0 : index
    %2 = vector.load %arg2[%c0_1, %c0_2] : memref<16x128xi32, #tpu.memory_space<vmem>>, vector<16x128xi32>
    %cst_3 = arith.constant dense<0> : vector<16x128xi32>
    %3 = arith.cmpi ne, %2, %cst_3 : vector<16x128xi32>
    %4 = arith.ori %1, %3 : vector<16x128xi1>
    %c0_4 = arith.constant 0 : index
    %c0_5 = arith.constant 0 : index
    %5 = vector.load %arg3[%c0_4, %c0_5] : memref<16x128xi32, #tpu.memory_space<vmem>>, vector<16x128xi32>
    %6 = arith.extui %4 : vector<16x128xi1> to vector<16x128xi32>
    %cst_6 = arith.constant dense<0> : vector<16x128xi32>
    %7 = arith.cmpi ne, %5, %cst_6 : vector<16x128xi32>
    tpu.vector_store %arg3[%c0_4, %c0_5], %6 {strides = array<i32>} : memref<16x128xi32, #tpu.memory_space<vmem>>, vector<16x128xi32>,
    return
  }
  func.func @transform_0(%arg0: i32) -> (i32, i32) {
    %c0_i32 = arith.constant 0 : i32
    %c0_i32_0 = arith.constant 0 : i32
    return %arg0, %c0_i32 : i32, i32
  }
  func.func @transform_1(%arg0: i32) -> (i32, i32) {
    %c0_i32 = arith.constant 0 : i32
    %c0_i32_0 = arith.constant 0 : i32
    return %arg0, %c0_i32 : i32, i32
  }
  func.func @transform_2(%arg0: i32) -> (i32, i32) {
    %c0_i32 = arith.constant 0 : i32
    %c0_i32_0 = arith.constant 0 : i32
    return %arg0, %c0_i32 : i32, i32
  }
}

</mosaic_0001>

<bundles_post_ra>
// kernel: tpu_custom_call.1
= control target key start
LH: loop header
LB: loop body
LE: loop exit
PB: predicated region body
PF: predicated region fallthrough
CT: control target
= control target key end

     0   :  { %v30_v4 = vmov 0   ;;  %s64_s0 = inlined_call_operand.vmem [shape: s32[16,128], index: 0, kind: input, shape index: {}]   ;;  %s65_s1 = inlined_call_operand.vmem [shape: s32[16,128], index: 1, kind: input, shape index: {}]   ;;  %s66_s2 = inlined_call_operand.vmem [shape: s32[16,128], index: 2, kind: output, shape index: {}]  }
   0x1   :  { %v11_v0 = vld [vmem:[%s64_s0] sm:$0xff]  ;;  %v12_v2 = vld [vmem:[%s64_s0 + $0x8] sm:$0xff] }
   0x2   :  { %v15_v1 = vld [vmem:[%s65_s1] sm:$0xff]  ;;  %vm13_vm0 = vcmp.ne.s32.totalorder %v11_v0, 0  ;;  %vm14_vm2 = vcmp.ne.s32.totalorder %v12_v2, 0  ;;  %v16_v3 = vld [vmem:[%s65_s1 + $0x8] sm:$0xff] }
   0x3   :  { %vm17_vm1 = vcmp.ne.s32.totalorder %v15_v1, 0  ;;  %vm18_vm4 = vcmp.ne.s32.totalorder %v16_v3, 0 }
   0x4   :  { %vm19_vm3 = vmor %vm13_vm0, %vm17_vm1 }
   0x5   :  { %v21_v5 = vsel %vm19_vm3, 1, %v30_v4  ;;  %vm20_vm5 = vmor %vm14_vm2, %vm18_vm4 }
   0x6   :  { %23 = vst [vmem:[%s66_s2] sm:$0xff] %v21_v5  ;;  %v22_v6 = vsel %vm20_vm5, 1, %v30_v4 }
   0x7   :  { %24 = vst [vmem:[%s66_s2 + $0x8] sm:$0xff] %v22_v6 }

</bundles_post_ra>
